<compile_context>
chip_gen: v6e
topology: v6e:2x2x1
jax: 0.10.0
libtpu: 0.0.40
codegen_flags: <defaults>
</compile_context>

<pallas_src>
import functools

import jax
import jax.numpy as jnp
from jax.experimental import pallas as pl
from jax.experimental.pallas import tpu as pltpu


# ----------------------------------------------------------------------------
# tiling helpers
# ----------------------------------------------------------------------------

def _pick_tile(dim, candidates):
    """Largest candidate that evenly divides `dim`; else the full dim (valid
    block shape because it equals the array extent)."""
    for c in candidates:
        if c <= dim and dim % c == 0:
            return c
    return dim


def _pick_head_block(num_heads, seq_len, bytes_budget=6 * 1024 * 1024):
    """Pack as many heads per attention grid step as fit a modest f32-score
    budget (fills the 128-lane axis when Dh < 128, cuts per-step overhead)."""
    best = 1
    for hb in range(1, num_heads + 1):
        if num_heads % hb == 0 and hb * seq_len * seq_len * 4 <= bytes_budget:
            best = hb
    return best


# ----------------------------------------------------------------------------
# fused (LayerNorm) -> matmul -> (+bias, quick_gelu, +residual) kernel
# ----------------------------------------------------------------------------

def _linear_kernel(*refs, apply_ln, activation, add_residual, eps):
    idx = 0
    x_ref = refs[idx]; idx += 1
    if apply_ln:
        g_ref = refs[idx]; beta_ref = refs[idx + 1]; idx += 2
    w_ref = refs[idx]; b_ref = refs[idx + 1]; idx += 2
    if add_residual:
        r_ref = refs[idx]; idx += 1
    o_ref = refs[idx]

    xv = x_ref[...]                                     # (tm, K)
    if apply_ln:                                        # LN in f32, full K present
        x32 = xv.astype(jnp.float32)
        mean = jnp.mean(x32, axis=-1, keepdims=True)
        var = jnp.mean(jnp.square(x32 - mean), axis=-1, keepdims=True)
        x32 = (x32 - mean) * jax.lax.rsqrt(var + eps)
        x32 = x32 * g_ref[...].astype(jnp.float32) + beta_ref[...].astype(jnp.float32)
        xv = x32.astype(w_ref.dtype)

    acc = jnp.dot(xv, w_ref[...], preferred_element_type=jnp.float32)  # (tm, tn)
    acc = acc + b_ref[...].astype(jnp.float32)
    if activation == "quick_gelu":                      # CLIP MLP activation
        acc = acc * jax.nn.sigmoid(1.702 * acc)
    if add_residual:
        acc = acc + r_ref[...].astype(jnp.float32)
    o_ref[...] = acc.astype(o_ref.dtype)


def pallas_fused_linear(x, w, b, *, ln=None, activation=None, residual=None):
    """x: (M, K), w: (K, N), b: (N,) -> (M, N).

    Optional fusions: `ln=(gamma, beta)` applies LayerNorm(x) before the GEMM,
    `activation='quick_gelu'` and `residual=(M, N) array` run in the epilogue.
    Tiled over (M, N) with full-K blocks (K <= 4096 for CLIP-L).
    """
    M, K = x.shape
    N = w.shape[1]
    tm = _pick_tile(M, (512, 256, 128, 64, 32, 16, 8))
    tn = _pick_tile(N, (512, 256, 128))
    grid = (M // tm, N // tn)

    in_specs = [pl.BlockSpec((tm, K), lambda i, j: (i, 0))]
    args = [x]
    if ln is not None:
        g, beta = ln
        in_specs += [pl.BlockSpec((1, K), lambda i, j: (0, 0)),
                     pl.BlockSpec((1, K), lambda i, j: (0, 0))]
        args += [g.reshape(1, K), beta.reshape(1, K)]
    in_specs += [pl.BlockSpec((K, tn), lambda i, j: (0, j)),
                 pl.BlockSpec((1, tn), lambda i, j: (0, j))]
    args += [w, b.reshape(1, N)]
    if residual is not None:
        in_specs += [pl.BlockSpec((tm, tn), lambda i, j: (i, j))]
        args += [residual]

    kernel = functools.partial(
        _linear_kernel, apply_ln=ln is not None, activation=activation,
        add_residual=residual is not None, eps=1e-5)

    return pl.pallas_call(
        kernel,
        out_shape=jax.ShapeDtypeStruct((M, N), x.dtype),
        grid=grid,
        in_specs=in_specs,
        out_specs=pl.BlockSpec((tm, tn), lambda i, j: (i, j)),
        compiler_params=pltpu.CompilerParams(
            dimension_semantics=("parallel", "parallel")),
    )(*args)


# ----------------------------------------------------------------------------
# standalone row-tiled LayerNorm (pre_layrnorm only; encoder LNs are fused)
# ----------------------------------------------------------------------------

def _layernorm_kernel(x_ref, g_ref, b_ref, o_ref, *, eps):
    x = x_ref[...].astype(jnp.float32)
    mean = jnp.mean(x, axis=-1, keepdims=True)
    var = jnp.mean(jnp.square(x - mean), axis=-1, keepdims=True)
    y = (x - mean) * jax.lax.rsqrt(var + eps)
    o_ref[...] = (y * g_ref[...].astype(jnp.float32)
                  + b_ref[...].astype(jnp.float32)).astype(o_ref.dtype)


def pallas_layernorm(x, g, b, eps=1e-5):
    """x: (M, D), g/b: (D,). Row-tiled, pipelined, parallel over rows."""
    M, D = x.shape
    tm = _pick_tile(M, (1024, 512, 256, 128, 64, 32, 16, 8))
    return pl.pallas_call(
        functools.partial(_layernorm_kernel, eps=eps),
        out_shape=jax.ShapeDtypeStruct((M, D), x.dtype),
        grid=(M // tm,),
        in_specs=[pl.BlockSpec((tm, D), lambda i: (i, 0)),
                  pl.BlockSpec((1, D), lambda i: (0, 0)),
                  pl.BlockSpec((1, D), lambda i: (0, 0))],
        out_specs=pl.BlockSpec((tm, D), lambda i: (i, 0)),
        compiler_params=pltpu.CompilerParams(dimension_semantics=("parallel",)),
    )(x, g.reshape(1, D), b.reshape(1, D))


# ----------------------------------------------------------------------------
# multi-head-packed scaled-dot-product attention
# ----------------------------------------------------------------------------

def _attention_kernel(q_ref, k_ref, v_ref, o_ref, *, scale):
    q = (q_ref[0].astype(jnp.float32) * scale).astype(k_ref.dtype)   # (Hb, T, Dh)
    # Batched over heads, contraction on Dh (no explicit k.T transpose).
    s = jnp.einsum('hqd,hkd->hqk', q, k_ref[0],
                   preferred_element_type=jnp.float32)                # (Hb, T, T)
    m = jnp.max(s, axis=-1, keepdims=True)
    p = jnp.exp(s - m)
    denom = jnp.sum(p, axis=-1, keepdims=True)
    p = p * pl.reciprocal(denom, approx=True)                         # EUP slot
    o = jnp.einsum('hqk,hkd->hqd', p.astype(v_ref.dtype), v_ref[0],
                   preferred_element_type=jnp.float32)                # (Hb, T, Dh)
    o_ref[0] = o.astype(o_ref.dtype)


def pallas_attention(q, k, v, scale):
    """q/k/v: (B, H, T, Dh). One grid step per (batch, head-group)."""
    B, H, T, Dh = q.shape
    Hb = _pick_head_block(H, T)
    spec = pl.BlockSpec((1, Hb, T, Dh), lambda b, g: (b, g, 0, 0))
    return pl.pallas_call(
        functools.partial(_attention_kernel, scale=scale),
        out_shape=jax.ShapeDtypeStruct((B, H, T, Dh), q.dtype),
        grid=(B, H // Hb),
        in_specs=[spec, spec, spec],
        out_specs=spec,
        compiler_params=pltpu.CompilerParams(
            dimension_semantics=("parallel", "parallel")),
    )(q, k, v)


# ----------------------------------------------------------------------------
# CLIP vision model forward (glue in plain JAX, compute in Pallas kernels)
# ----------------------------------------------------------------------------

def clip_vision_hidden_states(pixel_values, params, cfg):
    """Returns the list of encoder hidden states (same semantics as HF CLIP)."""
    B, C, H, W = pixel_values.shape
    p = cfg["patch_size"]
    D = cfg["hidden_size"]
    h = cfg["num_heads"]
    dh = D // h
    gh, gw = H // p, W // p

    # Patch embedding: Conv2d(C, D, kernel=p, stride=p, bias=False) == patch matmul.
    patches = (
        pixel_values.reshape(B, C, gh, p, gw, p)
        .transpose(0, 2, 4, 1, 3, 5)
        .reshape(B * gh * gw, C * p * p)
    )
    zero_bias = jnp.zeros((D,), pixel_values.dtype)
    x = pallas_fused_linear(patches, params["patch_w"], zero_bias)    # (B*P, D)
    x = x.reshape(B, gh * gw, D)

    cls = jnp.broadcast_to(params["class_embed"].reshape(1, 1, D), (B, 1, D))
    x = jnp.concatenate([cls, x], axis=1)                             # (B, T, D)
    x = x + params["pos_embed"][None, :, :]
    T = x.shape[1]
    scale = float(dh) ** -0.5

    # pre_layrnorm (applied before the encoder in HF CLIPVisionTransformer)
    x2d = pallas_layernorm(x.reshape(B * T, D), params["pre_ln_g"], params["pre_ln_b"])
    hidden_states = [x2d.reshape(B, T, D)]

    for layer in params["layers"]:
        x2d = hidden_states[-1].reshape(B * T, D)

        # --- self attention block: fused LN1 + QKV GEMM, packed-head SDPA,
        #     o-proj with fused residual add ---
        qkv = pallas_fused_linear(x2d, layer["qkv_w"], layer["qkv_b"],
                                  ln=(layer["ln1_g"], layer["ln1_b"]))  # (B*T, 3D)
        qkv = qkv.reshape(B, T, 3, h, dh).transpose(2, 0, 3, 1, 4)      # (3,B,H,T,dh)
        # TODO(synk): the head split/merge transposes are still JAX-level relayouts;
        # BlockSpec column-offset indexing into the (B*T, 3D) slab would remove them.
        q, k, v = qkv[0], qkv[1], qkv[2]
        o = pallas_attention(q, k, v, scale=scale)                      # (B,H,T,dh)
        o2d = o.transpose(0, 2, 1, 3).reshape(B * T, D)
        x2d = pallas_fused_linear(o2d, layer["o_w"], layer["o_b"], residual=x2d)

        # --- MLP block: fused LN2 + fc1 + quick_gelu, fc2 with fused residual ---
        resid = x2d
        y = pallas_fused_linear(x2d, layer["fc1_w"], layer["fc1_b"],
                                ln=(layer["ln2_g"], layer["ln2_b"]),
                                activation="quick_gelu")
        x2d = pallas_fused_linear(y, layer["fc2_w"], layer["fc2_b"], residual=resid)

        hidden_states.append(x2d.reshape(B, T, D))

    return hidden_states


def llava_vision_tower_forward(images, params, cfg):
    """Reproduces LLaVAVisionTower.forward:
       hidden_states[mm_vision_select_layer_]; 'patch' feature drops CLS token."""
    hidden_states = clip_vision_hidden_states(images, params, cfg)
    hs = hidden_states[cfg["mm_vision_select_layer"]]
    if cfg["mm_vision_select_feature"] == "patch":
        image_features = hs[:, 1:]
    else:
        image_features = hs
    return {"image_features": image_features}


# ----------------------------------------------------------------------------
# Deterministic synthetic parameter construction
# ----------------------------------------------------------------------------

def init_params(key, cfg, dtype=jnp.bfloat16):
    C = cfg["num_channels"]
    p = cfg["patch_size"]
    D = cfg["hidden_size"]
    F = cfg["mlp_size"]
    T = cfg["num_patches"] + 1

    keys = iter(jax.random.split(key, 16 + 16 * cfg["num_layers"]))
    n = lambda shape, scale=0.02: (scale * jax.random.normal(next(keys), shape)).astype(dtype)

    params = {
        "patch_w": n((C * p * p, D)),          # conv weight (D, C, p, p) reshaped/transposed
        "class_embed": n((D,)),
        "pos_embed": n((T, D)),
        "pre_ln_g": jnp.ones((D,), dtype),
        "pre_ln_b": jnp.zeros((D,), dtype),
        "layers": [],
    }
    for _ in range(cfg["num_layers"]):
        params["layers"].append({
            "ln1_g": jnp.ones((D,), dtype), "ln1_b": jnp.zeros((D,), dtype),
            # fused Q/K/V projection: columns [0:D]=Q, [D:2D]=K, [2D:3D]=V
            "qkv_w": n((D, 3 * D)), "qkv_b": n((3 * D,)),
            "o_w": n((D, D)), "o_b": n((D,)),
            "ln2_g": jnp.ones((D,), dtype), "ln2_b": jnp.zeros((D,), dtype),
            "fc1_w": n((D, F)), "fc1_b": n((F,)),
            "fc2_w": n((F, D)), "fc2_b": n((D,)),
        })
    return params


if __name__ == "__main__":
    # Small CLIP-ViT-like config consistent with the module's forward semantics.
    # TODO(synk): real config is fp16, 24 layers, hidden 1024, mlp 4096, T=577;
    # scaled down here. Image preprocessing (CLIPImageProcessor) is host-side and
    # not implemented.
    cfg = {
        "num_channels": 3,
        "image_size": 16,
        "patch_size": 4,
        "hidden_size": 32,
        "num_heads": 4,
        "mlp_size": 64,
        "num_layers": 3,
        "mm_vision_select_layer": -2,
        "mm_vision_select_feature": "patch",
    }
    cfg["num_patches"] = (cfg["image_size"] // cfg["patch_size"]) ** 2

    key = jax.random.PRNGKey(0)
    k_img, k_params = jax.random.split(key)
    images = jax.random.normal(
        k_img, (2, cfg["num_channels"], cfg["image_size"], cfg["image_size"]),
        dtype=jnp.float32).astype(jnp.bfloat16)
    params = init_params(k_params, cfg, dtype=jnp.bfloat16)

    out = llava_vision_tower_forward(images, params, cfg)
    feats = jax.block_until_ready(out["image_features"])

    expected = (2, cfg["num_patches"], cfg["hidden_size"])  # CLS token dropped
    assert feats.shape == expected, (feats.shape, expected)
    assert bool(jnp.all(jnp.isfinite(feats.astype(jnp.float32))))
    print("KERNEL_OK")
</pallas_src>

<mosaic_0001>
module attributes {stable_mosaic.version = 11 : i64} {
  func.func @_linear_kernel(%arg0: i32, %arg1: i32, %arg2: memref<32x48xbf16, #tpu.memory_space<vmem>>, %arg3: memref<48x32xbf16, #tpu.memory_space<vmem>>, %arg4: memref<1x32xbf16, #tpu.memory_space<vmem>>, %arg5: memref<32x32xbf16, #tpu.memory_space<vmem>>) attributes {dimension_semantics = [#tpu.dimension_semantics<parallel>, #tpu.dimension_semantics<parallel>], iteration_bounds = array<i64: 1, 1>, scalar_prefetch = 0 : i64, scratch_operands = 0 : i64, tpu.core_type = #tpu.core_type<tc>, window_params = [{transform_indices = @transform_0, window_bounds = array<i64: 32, 48>}, {transform_indices = @transform_1, window_bounds = array<i64: 48, 32>}, {transform_indices = @transform_2, window_bounds = array<i64: 1, 32>}, {transform_indices = @transform_3, window_bounds = array<i64: 32, 32>}]} {
    %c0 = arith.constant 0 : index
    %c0_0 = arith.constant 0 : index
    %0 = vector.load %arg2[%c0, %c0_0] : memref<32x48xbf16, #tpu.memory_space<vmem>>, vector<32x48xbf16>
    %c0_1 = arith.constant 0 : index
    %c0_2 = arith.constant 0 : index
    %1 = vector.load %arg3[%c0_1, %c0_2] : memref<48x32xbf16, #tpu.memory_space<vmem>>, vector<48x32xbf16>
    %cst = arith.constant dense<0.000000e+00> : vector<32x32xf32>
    %2 = tpu.matmul %0, %1, %cst {dimension_numbers = #tpu.dot_dimension_numbers<[1], [0], [0], [1], [0, 0, 1, 1], [], []>} : vector<32x48xbf16>, vector<48x32xbf16>, vector<32x32xf32> -> vector<32x32xf32>
    %c0_3 = arith.constant 0 : index
    %c0_4 = arith.constant 0 : index
    %3 = vector.load %arg4[%c0_3, %c0_4] : memref<1x32xbf16, #tpu.memory_space<vmem>>, vector<1x32xbf16>
    %4 = arith.extf %3 : vector<1x32xbf16> to vector<1x32xf32>
    %5 = vector.broadcast %4 : vector<1x32xf32> to vector<32x32xf32>
    %6 = arith.addf %2, %5 : vector<32x32xf32>
    %7 = arith.truncf %6 : vector<32x32xf32> to vector<32x32xbf16>
    %c0_5 = arith.constant 0 : index
    %c0_6 = arith.constant 0 : index
    %8 = vector.load %arg5[%c0_5, %c0_6] : memref<32x32xbf16, #tpu.memory_space<vmem>>, vector<32x32xbf16>
    tpu.vector_store %arg5[%c0_5, %c0_6], %7 {strides = array<i32>} : memref<32x32xbf16, #tpu.memory_space<vmem>>, vector<32x32xbf16>,
    return
  }
  func.func @transform_0(%arg0: i32, %arg1: i32) -> (i32, i32) {
    %c0_i32 = arith.constant 0 : i32
    %c0_i32_0 = arith.constant 0 : i32
    return %arg0, %c0_i32 : i32, i32
  }
  func.func @transform_1(%arg0: i32, %arg1: i32) -> (i32, i32) {
    %c0_i32 = arith.constant 0 : i32
    %c0_i32_0 = arith.constant 0 : i32
    return %c0_i32, %arg1 : i32, i32
  }
  func.func @transform_2(%arg0: i32, %arg1: i32) -> (i32, i32) {
    %c0_i32 = arith.constant 0 : i32
    %c0_i32_0 = arith.constant 0 : i32
    return %c0_i32, %arg1 : i32, i32
  }
  func.func @transform_3(%arg0: i32, %arg1: i32) -> (i32, i32) {
    %c0_i32 = arith.constant 0 : i32
    return %arg0, %arg1 : i32, i32
  }
}

</mosaic_0001>

<bundles_post_ra>
// kernel: tpu_custom_call.1
= control target key start
LH: loop header
LB: loop body
LE: loop exit
PB: predicated region body
PF: predicated region fallthrough
CT: control target
= control target key end

     0   :  { %vm60_vm0 = vcmask 392192   ;;  %s261_s0 = inlined_call_operand.vmem [shape: bf16[32,48], index: 0, kind: input, shape index: {}]   ;;  %s262_s1 = inlined_call_operand.vmem [shape: bf16[48,32], index: 1, kind: input, shape index: {}]   ;;  %s263_s2 = inlined_call_operand.vmem [shape: bf16[1,32], index: 2, kind: input, shape index: {}]   ;;  %s264_s3 = inlined_call_operand.hbm [shape: bf16[32,32], index: 3, kind: output, shape index: {}]  }
   0x1   :  { %v186_v0 = vld [vmem:[%s262_s1 + $0x10] sm:$0xff]   ;;  %v187_v1 = vld [vmem:[%s262_s1 + $0x8] sm:$0xff]   ;;  %v189_v2 = vld [vmem:[%s261_s0] sm:$0xff]  }
   0x2   :  { %173 = vmatprep.subr.bf16.mxu0 %v186_v0  ;;  %v188_v3 = vld [vmem:[%s262_s1] sm:$0xff]   ;;  %179 = vmatprep.mubr.msk.bf16.mxu0 %vm60_vm0, %v189_v2 }
   0x3   :  { %174 = vmatpush3.bf16.msra.mxu0 %v186_v0 }
   0x4   :  { %175 = vmatprep.subr.bf16.mxu0 %v187_v1 }
   0x5   :  { %8 = vsyncpa [#allocation3], 0  ;;  %v190_v4 = vld [vmem:[%s261_s0 + $0x8] sm:$0xff]   ;;  %v28_v5 = vlaneseq  ;;  %v26_v7 = vld [vmem:[%s263_s2] sm:$0x1]  ;;  %vm132_vm1 = vcmask 257024  }
   0x6   :  { %v27_v8 = vunpack.c.l.bf16 %v26_v7  ;;  %s213_s0 = smov [#allocation2]  }
   0x7   :  { %176 = vmatpush3.bf16.msra.mxu0 %v187_v1  ;;  %v29_v6 = vshrl.u32 %v28_v5, 7  ;;  %s142_s1 = sshll.u32 %s213_s0, 4  ;;  %s143_s1 = int_to_ptr.vmem [resolvable:$true] %s142_s1 }
   0x8   :  { %177 = vmatprep.subr.bf16.mxu0 %v188_v3  ;;  %s191_s2 = scalar_lea.vmem %s143_s1, 256  ;;  %p196_p1 = scmp.lt.s32.totalorder %s143_s1, %s143_s1 }
   0x9   :  { %v30_v9 = vsub.s32 0, %v29_v6  ;;  %p192_p0 = scmp.ne.s32.totalorder %s143_s1, %s191_s2  ;;  %p197_p2 = scmp.lt.s32.totalorder %s191_s2, %s191_s2 }
   0xb   :  { %178 = vmatpush3.bf16.msra.mxu0 %v188_v3  ;;  %v31_v10 = vrot.slane %v27_v8, %v30_v9  ;;  %p198_p3 = por %p197_p2, %p196_p1 }
   0xd   :  { %p199_p4 = pnand %p198_p3, %p192_p0 }
   0xe   :  { %180 = vmatmul.mubr.msk.bf16.vlgmr.msra.gmra.mxu0 %vm60_vm0, %v190_v4 }
  0xce   :  { %v181_v11 = vpop.f32.mrf.mxu0 }
  0xcf   :  { %v110_v12 = vadd.f32 %v181_v11, %v31_v10 }
  0xd0   :  { %v101_v13 = vpop.f32.mrf.mxu0 }
  0xd1   :  { %v166_v14 = vpack.c.bf16 %v110_v12, %v110_v12  ;;  %v102_v15 = vadd.f32 %v101_v13, %v31_v10 }
  0xd2   :  { %v182_v16 = vpop.f32.mrf.mxu0 }
  0xd3   :  { %135 = vst.msk [vmem:[#allocation2 + $0x8] sm:$0xf] %vm132_vm1, %v166_v14  ;;  %v164_v17 = vpack.c.bf16 %v102_v15, %v102_v15  ;;  %v113_v18 = vadd.f32 %v182_v16, %v31_v10 }
  0xd4   :  { %v104_v19 = vpop.f32.mrf.mxu0 }
  0xd5   :  { %133 = vst.msk [vmem:[#allocation2] sm:$0xf] %vm132_vm1, %v164_v17  ;;  %v167_v20 = vpack.c.bf16 %v113_v18, %v113_v18  ;;  %v105_v21 = vadd.f32 %v104_v19, %v31_v10 }
  0xd7   :  { %136 = vst.msk [vmem:[#allocation2 + $0xc] sm:$0xf] %vm132_vm1, %v167_v20  ;;  %v165_v22 = vpack.c.bf16 %v105_v21, %v105_v21 }
  0xd9   :  { %134 = vst.msk [vmem:[#allocation2 + $0x4] sm:$0xf] %vm132_vm1, %v165_v22 }
  0xda   :  { %202 = shalt.err (!%p199_p4)
}
  0xdb   :  { %s214_s24 = smov 64   ;;  %s215_s25 = smov 4  }
  0xdc   :  { %148 = dma.vmem_to_hbm [thread:$0]  %s143_s1, 256, %s264_s3, [#allocation3], %s214_s24, %s214_s24, %s215_s25  }
  0xdd   :  { %211 = dma.done.wait [#allocation3], 256  }
  0xde   :  { %212 = vsyncadd [#allocation3], 4294967040 }
  0xdf   :  { %152 = vsyncpa [#allocation3], 1 }

</bundles_post_ra>
